<compile_context>
chip_gen: v5e
topology: v5e:2x2
jax: 0.10.0
libtpu: 0.0.40
codegen_flags: <defaults>
</compile_context>

<pallas_src>
import functools

import numpy as np
import jax
import jax.numpy as jnp
from jax import lax
from jax.experimental import pallas as pl
from jax.experimental.pallas import tpu as pltpu


# --------------------------- shared in-kernel step math ---------------------------

def _lstm_step_math(z, h, c, zh_scratch, w_ref, b_ref, wfc_ref, bfc_ref,
                    latent_dim, d_in):
    """One LSTMCell + fc_affine + (mu|sigma) step. z/h/c are f32 values already loaded."""
    H = h.shape[1]

    # Assemble [z | h] in bf16 VMEM scratch -> single K = (d_in + H) MXU contraction.
    zh_scratch[:, :d_in] = z.astype(jnp.bfloat16)
    zh_scratch[:, d_in:] = h.astype(jnp.bfloat16)

    gates = (jnp.dot(zh_scratch[...], w_ref[...],
                     preferred_element_type=jnp.float32) + b_ref[...])

    # PyTorch LSTMCell gate order: input, forget, cell(g), output. 128-aligned slices.
    i_g = jax.nn.sigmoid(gates[:, 0 * H:1 * H])
    f_g = jax.nn.sigmoid(gates[:, 1 * H:2 * H])
    g_g = jnp.tanh(gates[:, 2 * H:3 * H])
    o_g = jax.nn.sigmoid(gates[:, 3 * H:4 * H])

    c_new = f_g * c + i_g * g_g               # f32 state
    h_new = o_g * jnp.tanh(c_new)

    # fc_affine_layer fused while h_new is still in vregs.
    latent = (jnp.dot(h_new.astype(jnp.bfloat16), wfc_ref[...],
                      preferred_element_type=jnp.float32) + bfc_ref[...])

    # AxisAlignedConvGaussian parameters packed lane-dense as [mu | sigma].
    lane = lax.broadcasted_iota(jnp.int32, latent.shape, 1)
    musig = jnp.where(lane < latent_dim, latent, jnp.exp(latent))
    return latent, musig, h_new, c_new


# --------------------------- single-step kernel (module forward) ---------------------------

def _step_kernel(z_ref, h_ref, c_ref, w_ref, b_ref, wfc_ref, bfc_ref,
                 lat_ref, musig_ref, hnew_ref, cnew_ref, zh_scratch,
                 *, latent_dim, d_in):
    latent, musig, h_new, c_new = _lstm_step_math(
        z_ref[...], h_ref[...], c_ref[...], zh_scratch,
        w_ref, b_ref, wfc_ref, bfc_ref, latent_dim, d_in)
    lat_ref[...] = latent
    musig_ref[...] = musig
    hnew_ref[...] = h_new
    cnew_ref[...] = c_new


def probabilistic_lstm_step(z_t, h, c, params, latent_dim):
    """Single fused pallas_call for ProbabilisticSingleLayerLSTM.forward.

    Returns (latent_variables, hidden_state, cell_state, mu_sigma) where mu_sigma packs
    [mu | sigma] (sigma = exp(log_sigma)) lane-dense.
    """
    B, d_in = z_t.shape
    H = h.shape[1]
    d_out = params["w_fc"].shape[1]

    kernel = functools.partial(_step_kernel, latent_dim=latent_dim, d_in=d_in)
    vmem = lambda: pl.BlockSpec(memory_space=pltpu.MemorySpace.VMEM)

    lat, musig, h_new, c_new = pl.pallas_call(
        kernel,
        out_shape=(jax.ShapeDtypeStruct((B, d_out), jnp.float32),   # latent_variables
                   jax.ShapeDtypeStruct((B, d_out), jnp.float32),   # [mu | sigma]
                   jax.ShapeDtypeStruct((B, H), jnp.float32),       # hidden_state
                   jax.ShapeDtypeStruct((B, H), jnp.float32)),      # cell_state
        in_specs=[vmem() for _ in range(7)],
        out_specs=tuple(vmem() for _ in range(4)),
        scratch_shapes=[pltpu.VMEM((B, d_in + H), jnp.bfloat16)],
    )(z_t, h, c, params["w_gates"], params["b_gates"], params["w_fc"], params["b_fc"])
    return lat, h_new, c_new, musig


# --------------------------- fused T-step sequence kernel ---------------------------

def _seq_kernel(z_ref, h0_ref, c0_ref, w_ref, b_ref, wfc_ref, bfc_ref,
                lat_ref, musig_ref, hfin_ref, cfin_ref, zh_scratch,
                *, latent_dim, d_in):
    t = pl.program_id(0)

    @pl.when(t == 0)
    def _():
        hfin_ref[...] = h0_ref[...]
        cfin_ref[...] = c0_ref[...]

    # h/c carry lives in the resident output blocks (constant block index across grid).
    latent, musig, h_new, c_new = _lstm_step_math(
        z_ref[...], hfin_ref[...], cfin_ref[...], zh_scratch,
        w_ref, b_ref, wfc_ref, bfc_ref, latent_dim, d_in)

    hfin_ref[...] = h_new
    cfin_ref[...] = c_new
    lat_ref[...] = latent
    musig_ref[...] = musig


def probabilistic_lstm_sequence(z_seq, h0, c0, params, latent_dim):
    """Applies the module forward over T timesteps inside ONE pallas_call.

    Weights are DMA'd into VMEM once and stay resident; only the per-step z block and
    per-step latent outputs move each grid step.
    """
    T, B, d_in = z_seq.shape
    H = h0.shape[1]
    d_out = params["w_fc"].shape[1]
    d_cat = d_in + H

    kernel = functools.partial(_seq_kernel, latent_dim=latent_dim, d_in=d_in)
    const = lambda shape: pl.BlockSpec(shape, lambda t: (0,) * len(shape))

    return pl.pallas_call(
        kernel,
        out_shape=(jax.ShapeDtypeStruct((T, B, d_out), jnp.float32),  # latent per step
                   jax.ShapeDtypeStruct((T, B, d_out), jnp.float32),  # [mu | sigma] per step
                   jax.ShapeDtypeStruct((B, H), jnp.float32),         # final hidden
                   jax.ShapeDtypeStruct((B, H), jnp.float32)),        # final cell
        grid=(T,),
        in_specs=[pl.BlockSpec((None, B, d_in), lambda t: (t, 0, 0)),  # z_t (per step)
                  const((B, H)),                                       # h0
                  const((B, H)),                                       # c0
                  const((d_cat, 4 * H)),                               # [W_ih^T; W_hh^T], resident
                  const((1, 4 * H)),                                   # b_ih + b_hh
                  const((H, d_out)),                                   # W_fc^T, resident
                  const((1, d_out))],                                  # b_fc
        out_specs=(pl.BlockSpec((None, B, d_out), lambda t: (t, 0, 0)),
                   pl.BlockSpec((None, B, d_out), lambda t: (t, 0, 0)),
                   const((B, H)),
                   const((B, H))),
        scratch_shapes=[pltpu.VMEM((B, d_cat), jnp.bfloat16)],
        compiler_params=pltpu.CompilerParams(dimension_semantics=("arbitrary",)),
    )(z_seq, h0, c0, params["w_gates"], params["b_gates"], params["w_fc"], params["b_fc"])


# --------------------------- parameter init ---------------------------

def init_params(key, input_dim, hidden_dim, stochastic=True):
    cur_input_dim = 2 * input_dim if stochastic else input_dim
    ks = jax.random.split(key, 6)
    scale = 1.0 / np.sqrt(hidden_dim)
    w_ih = scale * jax.random.normal(ks[0], (4 * hidden_dim, cur_input_dim), jnp.float32)
    w_hh = scale * jax.random.normal(ks[1], (4 * hidden_dim, hidden_dim), jnp.float32)
    b_ih = scale * jax.random.normal(ks[2], (4 * hidden_dim,), jnp.float32)
    b_hh = scale * jax.random.normal(ks[3], (4 * hidden_dim,), jnp.float32)
    w_fc = scale * jax.random.normal(ks[4], (cur_input_dim, hidden_dim), jnp.float32)
    b_fc = scale * jax.random.normal(ks[5], (cur_input_dim,), jnp.float32)

    # Kernel layout: stacked+transposed bf16 gate weight, pre-summed f32 LSTM bias,
    # transposed bf16 fc weight, 2-D f32 biases.
    params = dict(
        w_gates=jnp.concatenate([w_ih.T, w_hh.T], axis=0).astype(jnp.bfloat16),  # [D+H, 4H]
        b_gates=(b_ih + b_hh).reshape(1, 4 * hidden_dim),                        # [1, 4H] f32
        w_fc=jnp.transpose(w_fc).astype(jnp.bfloat16),                           # [H, D_out]
        b_fc=b_fc.reshape(1, cur_input_dim),                                     # [1, D_out]
    )
    ref = dict(w_ih=w_ih, w_hh=w_hh, b_ih=b_ih, b_hh=b_hh, w_fc=w_fc, b_fc=b_fc)
    return params, ref, cur_input_dim


# --------------------------- pure-JAX f32 reference ---------------------------

def reference_step(z_t, h, c, rp, latent_dim):
    hp = lax.Precision.HIGHEST
    gates = (jnp.dot(z_t, rp["w_ih"].T, precision=hp) + rp["b_ih"]
             + jnp.dot(h, rp["w_hh"].T, precision=hp) + rp["b_hh"])
    H = h.shape[1]
    i_g = jax.nn.sigmoid(gates[:, 0 * H:1 * H])
    f_g = jax.nn.sigmoid(gates[:, 1 * H:2 * H])
    g_g = jnp.tanh(gates[:, 2 * H:3 * H])
    o_g = jax.nn.sigmoid(gates[:, 3 * H:4 * H])
    c_new = f_g * c + i_g * g_g
    h_new = o_g * jnp.tanh(c_new)
    latent = jnp.dot(h_new, rp["w_fc"].T, precision=hp) + rp["b_fc"]
    mu = latent[:, :latent_dim]
    sigma = jnp.exp(latent[:, latent_dim:])
    return latent, h_new, c_new, mu, sigma


# --------------------------- main ---------------------------

if __name__ == "__main__":
    B = 8
    input_dim = 64            # latent_dim
    hidden_dim = 128
    T = 6                     # timesteps for the fused-sequence variant
    stochastic = True

    key = jax.random.PRNGKey(0)
    kp, kz, kh, kc, kzs = jax.random.split(key, 5)
    params, rp, cur_input_dim = init_params(kp, input_dim, hidden_dim, stochastic)

    z_t = jax.random.normal(kz, (B, cur_input_dim), jnp.float32)
    h0 = 0.1 * jax.random.normal(kh, (B, hidden_dim), jnp.float32)
    c0 = 0.1 * jax.random.normal(kc, (B, hidden_dim), jnp.float32)

    def check(a, b, name, atol, rtol):
        a, b = np.asarray(a), np.asarray(b)
        err = float(np.max(np.abs(a - b)))
        assert np.allclose(a, b, rtol=rtol, atol=atol), (name, err)

    # ---- single step (matches ProbabilisticSingleLayerLSTM.forward) ----
    latent, h1, c1, musig = probabilistic_lstm_step(z_t, h0, c0, params, input_dim)
    latent, h1, c1, musig = jax.block_until_ready((latent, h1, c1, musig))

    assert latent.shape == (B, cur_input_dim) and musig.shape == (B, cur_input_dim)
    assert h1.shape == (B, hidden_dim) and c1.shape == (B, hidden_dim)

    lat_r, h_r, c_r, mu_r, sig_r = reference_step(z_t, h0, c0, rp, input_dim)
    lat_r, h_r, c_r, mu_r, sig_r = jax.block_until_ready((lat_r, h_r, c_r, mu_r, sig_r))

    check(latent, lat_r, "latent", 2e-2, 2e-2)
    check(h1, h_r, "hidden", 2e-2, 2e-2)
    check(c1, c_r, "cell", 2e-2, 2e-2)
    check(np.asarray(musig)[:, :input_dim], mu_r, "mu", 2e-2, 2e-2)
    check(np.asarray(musig)[:, input_dim:], sig_r, "sigma", 2e-2, 2e-2)

    # ---- fused T-step sequence (weights resident in VMEM across steps) ----
    z_seq = jax.random.normal(kzs, (T, B, cur_input_dim), jnp.float32)
    lat_seq, musig_seq, h_fin, c_fin = probabilistic_lstm_sequence(
        z_seq, h0, c0, params, input_dim)
    lat_seq, musig_seq, h_fin, c_fin = jax.block_until_ready(
        (lat_seq, musig_seq, h_fin, c_fin))

    h_ref, c_ref = h0, c0
    lat_ref_seq, mu_ref_seq, sig_ref_seq = [], [], []
    for t in range(T):
        lr, h_ref, c_ref, mr, sr = reference_step(z_seq[t], h_ref, c_ref, rp, input_dim)
        lat_ref_seq.append(lr); mu_ref_seq.append(mr); sig_ref_seq.append(sr)
    lat_ref_seq = jax.block_until_ready(jnp.stack(lat_ref_seq))

    check(lat_seq, lat_ref_seq, "latent_seq", 3e-2, 3e-2)
    check(h_fin, h_ref, "hidden_seq", 3e-2, 3e-2)
    check(c_fin, c_ref, "cell_seq", 3e-2, 3e-2)
    check(np.asarray(musig_seq)[:, :, :input_dim], np.stack(mu_ref_seq), "mu_seq", 3e-2, 3e-2)
    check(np.asarray(musig_seq)[:, :, input_dim:], np.stack(sig_ref_seq), "sigma_seq", 3e-2, 3e-2)

    # TODO(synk): ProbabilisticModel.sampling (Independent(Normal).rsample/sample) is a
    # distribution op outside this forward; the distribution is represented by [mu | sigma].
    print("KERNEL_OK")
</pallas_src>

<mosaic_0001>
module attributes {stable_mosaic.version = 11 : i64} {
  func.func @_step_kernel(%arg0: memref<8x128xf32, #tpu.memory_space<vmem>>, %arg1: memref<8x128xf32, #tpu.memory_space<vmem>>, %arg2: memref<8x128xf32, #tpu.memory_space<vmem>>, %arg3: memref<256x512xbf16, #tpu.memory_space<vmem>>, %arg4: memref<1x512xf32, #tpu.memory_space<vmem>>, %arg5: memref<128x128xbf16, #tpu.memory_space<vmem>>, %arg6: memref<1x128xf32, #tpu.memory_space<vmem>>, %arg7: memref<8x128xf32, #tpu.memory_space<vmem>>, %arg8: memref<8x128xf32, #tpu.memory_space<vmem>>, %arg9: memref<8x128xf32, #tpu.memory_space<vmem>>, %arg10: memref<8x128xf32, #tpu.memory_space<vmem>>, %arg11: memref<8x256xbf16, #tpu.memory_space<vmem>>) attributes {dimension_semantics = [], scalar_prefetch = 0 : i64, scratch_operands = 1 : i64, tpu.core_type = #tpu.core_type<tc>} {
    %c0 = arith.constant 0 : index
    %c0_0 = arith.constant 0 : index
    %0 = vector.load %arg0[%c0, %c0_0] : memref<8x128xf32, #tpu.memory_space<vmem>>, vector<8x128xf32>
    %c0_1 = arith.constant 0 : index
    %c0_2 = arith.constant 0 : index
    %1 = vector.load %arg1[%c0_1, %c0_2] : memref<8x128xf32, #tpu.memory_space<vmem>>, vector<8x128xf32>
    %c0_3 = arith.constant 0 : index
    %c0_4 = arith.constant 0 : index
    %2 = vector.load %arg2[%c0_3, %c0_4] : memref<8x128xf32, #tpu.memory_space<vmem>>, vector<8x128xf32>
    %3 = arith.truncf %0 : vector<8x128xf32> to vector<8x128xbf16>
    %c0_5 = arith.constant 0 : index
    %c0_6 = arith.constant 0 : index
    %4 = vector.load %arg11[%c0_5, %c0_6] : memref<8x256xbf16, #tpu.memory_space<vmem>>, vector<8x128xbf16>
    tpu.vector_store %arg11[%c0_5, %c0_6], %3 {strides = array<i32>} : memref<8x256xbf16, #tpu.memory_space<vmem>>, vector<8x128xbf16>,
    %5 = arith.truncf %1 : vector<8x128xf32> to vector<8x128xbf16>
    %c0_7 = arith.constant 0 : index
    %c128 = arith.constant 128 : index
    %6 = vector.load %arg11[%c0_7, %c128] : memref<8x256xbf16, #tpu.memory_space<vmem>>, vector<8x128xbf16>
    tpu.vector_store %arg11[%c0_7, %c128], %5 {strides = array<i32>} : memref<8x256xbf16, #tpu.memory_space<vmem>>, vector<8x128xbf16>,
    %c0_8 = arith.constant 0 : index
    %c0_9 = arith.constant 0 : index
    %7 = vector.load %arg11[%c0_8, %c0_9] : memref<8x256xbf16, #tpu.memory_space<vmem>>, vector<8x256xbf16>
    %c0_10 = arith.constant 0 : index
    %c0_11 = arith.constant 0 : index
    %8 = vector.load %arg3[%c0_10, %c0_11] : memref<256x512xbf16, #tpu.memory_space<vmem>>, vector<256x512xbf16>
    %cst = arith.constant dense<0.000000e+00> : vector<8x512xf32>
    %9 = tpu.matmul %7, %8, %cst {dimension_numbers = #tpu.dot_dimension_numbers<[1], [0], [0], [1], [0, 0, 1, 1], [], []>} : vector<8x256xbf16>, vector<256x512xbf16>, vector<8x512xf32> -> vector<8x512xf32>
    %c0_12 = arith.constant 0 : index
    %c0_13 = arith.constant 0 : index
    %10 = vector.load %arg4[%c0_12, %c0_13] : memref<1x512xf32, #tpu.memory_space<vmem>>, vector<1x512xf32>
    %11 = vector.broadcast %10 : vector<1x512xf32> to vector<8x512xf32>
    %12 = arith.addf %9, %11 : vector<8x512xf32>
    %13 = vector.extract_strided_slice %12 {offsets = [0, 0], sizes = [8, 128], strides = [1, 1]} : vector<8x512xf32> to vector<8x128xf32>
    %14 = arith.negf %13 : vector<8x128xf32>
    %15 = math.exp %14 : vector<8x128xf32>
    %cst_14 = arith.constant 1.000000e+00 : f32
    %16 = vector.broadcast %cst_14 : f32 to vector<8x128xf32>
    %17 = arith.addf %16, %15 : vector<8x128xf32>
    %18 = arith.divf %16, %17 : vector<8x128xf32>
    %19 = vector.extract_strided_slice %12 {offsets = [0, 128], sizes = [8, 128], strides = [1, 1]} : vector<8x512xf32> to vector<8x128xf32>
    %20 = arith.negf %19 : vector<8x128xf32>
    %21 = math.exp %20 : vector<8x128xf32>
    %cst_15 = arith.constant 1.000000e+00 : f32
    %22 = vector.broadcast %cst_15 : f32 to vector<8x128xf32>
    %23 = arith.addf %22, %21 : vector<8x128xf32>
    %24 = arith.divf %22, %23 : vector<8x128xf32>
    %25 = vector.extract_strided_slice %12 {offsets = [0, 256], sizes = [8, 128], strides = [1, 1]} : vector<8x512xf32> to vector<8x128xf32>
    %26 = math.tanh %25 : vector<8x128xf32>
    %27 = vector.extract_strided_slice %12 {offsets = [0, 384], sizes = [8, 128], strides = [1, 1]} : vector<8x512xf32> to vector<8x128xf32>
    %28 = arith.negf %27 : vector<8x128xf32>
    %29 = math.exp %28 : vector<8x128xf32>
    %cst_16 = arith.constant 1.000000e+00 : f32
    %30 = vector.broadcast %cst_16 : f32 to vector<8x128xf32>
    %31 = arith.addf %30, %29 : vector<8x128xf32>
    %32 = arith.divf %30, %31 : vector<8x128xf32>
    %33 = arith.mulf %24, %2 : vector<8x128xf32>
    %34 = arith.mulf %18, %26 : vector<8x128xf32>
    %35 = arith.addf %33, %34 : vector<8x128xf32>
    %36 = math.tanh %35 : vector<8x128xf32>
    %37 = arith.mulf %32, %36 : vector<8x128xf32>
    %38 = arith.truncf %37 : vector<8x128xf32> to vector<8x128xbf16>
    %c0_17 = arith.constant 0 : index
    %c0_18 = arith.constant 0 : index
    %39 = vector.load %arg5[%c0_17, %c0_18] : memref<128x128xbf16, #tpu.memory_space<vmem>>, vector<128x128xbf16>
    %cst_19 = arith.constant dense<0.000000e+00> : vector<8x128xf32>
    %40 = tpu.matmul %38, %39, %cst_19 {dimension_numbers = #tpu.dot_dimension_numbers<[1], [0], [0], [1], [0, 0, 1, 1], [], []>} : vector<8x128xbf16>, vector<128x128xbf16>, vector<8x128xf32> -> vector<8x128xf32>
    %c0_20 = arith.constant 0 : index
    %c0_21 = arith.constant 0 : index
    %41 = vector.load %arg6[%c0_20, %c0_21] : memref<1x128xf32, #tpu.memory_space<vmem>>, vector<1x128xf32>
    %42 = vector.broadcast %41 : vector<1x128xf32> to vector<8x128xf32>
    %43 = arith.addf %40, %42 : vector<8x128xf32>
    %44 = tpu.iota {dimensions = array<i32: 1>} : vector<8x128xi32>
    %c64_i32 = arith.constant 64 : i32
    %45 = vector.broadcast %c64_i32 : i32 to vector<8x128xi32>
    %46 = arith.cmpi slt, %44, %45 : vector<8x128xi32>
    %47 = math.exp %43 : vector<8x128xf32>
    %48 = arith.select %46, %43, %47 : vector<8x128xi1>, vector<8x128xf32>
    %c0_22 = arith.constant 0 : index
    %c0_23 = arith.constant 0 : index
    %49 = vector.load %arg7[%c0_22, %c0_23] : memref<8x128xf32, #tpu.memory_space<vmem>>, vector<8x128xf32>
    tpu.vector_store %arg7[%c0_22, %c0_23], %43 {strides = array<i32>} : memref<8x128xf32, #tpu.memory_space<vmem>>, vector<8x128xf32>,
    %c0_24 = arith.constant 0 : index
    %c0_25 = arith.constant 0 : index
    %50 = vector.load %arg8[%c0_24, %c0_25] : memref<8x128xf32, #tpu.memory_space<vmem>>, vector<8x128xf32>
    tpu.vector_store %arg8[%c0_24, %c0_25], %48 {strides = array<i32>} : memref<8x128xf32, #tpu.memory_space<vmem>>, vector<8x128xf32>,
    %c0_26 = arith.constant 0 : index
    %c0_27 = arith.constant 0 : index
    %51 = vector.load %arg9[%c0_26, %c0_27] : memref<8x128xf32, #tpu.memory_space<vmem>>, vector<8x128xf32>
    tpu.vector_store %arg9[%c0_26, %c0_27], %37 {strides = array<i32>} : memref<8x128xf32, #tpu.memory_space<vmem>>, vector<8x128xf32>,
    %c0_28 = arith.constant 0 : index
    %c0_29 = arith.constant 0 : index
    %52 = vector.load %arg10[%c0_28, %c0_29] : memref<8x128xf32, #tpu.memory_space<vmem>>, vector<8x128xf32>
    tpu.vector_store %arg10[%c0_28, %c0_29], %35 {strides = array<i32>} : memref<8x128xf32, #tpu.memory_space<vmem>>, vector<8x128xf32>,
    return
  }
}

</mosaic_0001>

<bundles_post_ra>
// kernel: tpu_custom_call.1
= control target key start
LH: loop header
LB: loop body
LE: loop exit
PB: predicated region body
PF: predicated region fallthrough
CT: control target
= control target key end

     0   :  { %16 = vsyncpa [#allocation4], 0  ;;  %s1643_s0 = inlined_call_operand.hbm [shape: f32[8,128], index: 0, kind: input, shape index: {}]   ;;  %s1644_s1 = inlined_call_operand.hbm [shape: f32[8,128], index: 1, kind: input, shape index: {}]   ;;  %s1645_s2 = inlined_call_operand.hbm [shape: f32[8,128], index: 2, kind: input, shape index: {}]   ;;  %s1646_s3 = inlined_call_operand.hbm [shape: bf16[256,512], index: 3, kind: input, shape index: {}]   ;;  %s1647_s4 = inlined_call_operand.hbm [shape: f32[1,512], index: 4, kind: input, shape index: {}]   ;;  %s1648_s5 = inlined_call_operand.hbm [shape: bf16[128,128], index: 5, kind: input, shape index: {}]   ;;  %s1649_s6 = inlined_call_operand.vmem [shape: f32[1,128], index: 6, kind: input, shape index: {}]   ;;  %s1650_s7 = inlined_call_operand.hbm [shape: f32[8,128], index: 7, kind: output, shape index: {0}]   ;;  %s1651_s8 = inlined_call_operand.hbm [shape: f32[8,128], index: 8, kind: output, shape index: {1}]   ;;  %s1652_s9 = inlined_call_operand.hbm [shape: f32[8,128], index: 9, kind: output, shape index: {2}]   ;;  %s1653_s10 = inlined_call_operand.hbm [shape: f32[8,128], index: 10, kind: output, shape index: {3}]  }
   0x1   :  { %17 = vsyncpa [#allocation7], 0 }
   0x2   :  { %18 = vsyncpa [#allocation10], 0 }
   0x3   :  { %19 = vsyncpa [#allocation13], 0 }
   0x4   :  { %20 = vsyncpa [#allocation5], 0 }
   0x5   :  { %21 = vsyncpa [#allocation16], 0  ;;  %s39_s15 = sshll.u32 %s1644_s1, 4  ;;  %s40_s15 = int_to_ptr.hbm [resolvable:$true] %s39_s15 }
   0x6   :  { %22 = vsyncpa [#allocation19], 0  ;;  %s1509_s16 = smov [#allocation6]   ;;  %s60_s20 = sshll.u32 %s1646_s3, 4  ;;  %s61_s20 = int_to_ptr.hbm [resolvable:$true] %s60_s20 }
   0x7   :  { %s41_s17 = sshll.u32 %s1509_s16, 4  ;;  %s1510_s21 = smov [#allocation9]   ;;  %s42_s17 = int_to_ptr.vmem [resolvable:$true] %s41_s17 }
   0x8   :  { %44 = dma.hbm_to_vmem [thread:$0]  %s40_s15, 128, %s42_s17, [#allocation7]  }
   0x9   :  { %s62_s22 = sshll.u32 %s1510_s21, 4  ;;  %s1511_s23 = smov 256   ;;  %s63_s22 = int_to_ptr.vmem [resolvable:$true] %s62_s22 }
   0xa   :  { %s1512_s24 = smov 16   ;;  %s28_s1 = sshll.u32 %s1643_s0, 4  ;;  %s29_s1 = int_to_ptr.hbm [resolvable:$true] %s28_s1 }
   0xb   :  { %68 = dma.hbm_to_vmem [thread:$0]  %s61_s20, 8192, %s63_s22, [#allocation10], %s1511_s23, %s1511_s23, %s1512_s24  }
   0xc   :  { %s1513_s27 = smov [#allocation3]   ;;  %s50_s3 = sshll.u32 %s1645_s2, 4  ;;  %s51_s3 = int_to_ptr.hbm [resolvable:$true] %s50_s3 }
   0xd   :  { %s30_s28 = sshll.u32 %s1513_s27, 4  ;;  %s1514_s11 = smov [#allocation8]   ;;  %s31_s28 = int_to_ptr.vmem [resolvable:$true] %s30_s28 }
   0xe   :  { %33 = dma.hbm_to_vmem [thread:$0]  %s29_s1, 128, %s31_s28, [#allocation4]  }
   0xf   :  { %s52_s12 = sshll.u32 %s1514_s11, 4  ;;  %s74_s15 = sshll.u32 %s1647_s4, 4  ;;  %s53_s12 = int_to_ptr.vmem [resolvable:$true] %s52_s12  ;;  %s75_s15 = int_to_ptr.hbm [resolvable:$true] %s74_s15 }
  0x10   :  { %55 = dma.hbm_to_vmem [thread:$0]  %s51_s3, 128, %s53_s12, [#allocation7]  }
  0x11   :  { %s84_s17 = sshll.u32 %s1648_s5, 4  ;;  %s1515_s18 = smov [#allocation11]   ;;  %s85_s17 = int_to_ptr.hbm [resolvable:$true] %s84_s17 }
  0x12   :  { %s76_s19 = sshll.u32 %s1515_s18, 4  ;;  %s1516_s2 = smov [#allocation12]   ;;  %s77_s19 = int_to_ptr.vmem [resolvable:$true] %s76_s19 }
  0x13   :  { %79 = dma.hbm_to_vmem [thread:$0]  %s75_s15, 64, %s77_s19, [#allocation10]  }
  0x14   :  { %s86_s20 = sshll.u32 %s1516_s2, 4  ;;  %s1517_s21 = smov 64   ;;  %s87_s20 = int_to_ptr.vmem [resolvable:$true] %s86_s20 }
  0x15   :  { %s1518_s22 = smov 4  }
  0x16   :  { %92 = dma.hbm_to_vmem [thread:$0]  %s85_s17, 1024, %s87_s20, [#allocation13], %s1517_s21, %s1517_s21, %s1518_s22  }
  0x17   :  { %1495 = dma.done.wait [#allocation4], 128  }
  0x18   :  { %1496 = vsyncadd [#allocation4], 4294967168 }
  0x19   :  { %1497 = dma.done.wait [#allocation7], 256  }
  0x1a   :  { %1498 = vsyncadd [#allocation7], 4294967040 }
  0x1b   :  { %1499 = dma.done.wait [#allocation10], 8256  }
  0x1c   :  { %1500 = vsyncadd [#allocation10], 4294959040 }
  0x1d   :  { %1501 = dma.done.wait [#allocation13], 1024  }
  0x1e   :  { %1502 = vsyncadd [#allocation13], 4294966272  ;;  %v968_v0 = vld [vmem:[#allocation9 + $0xe0] sm:$0xf]  ;;  %v1175_v1 = vld [vmem:[#allocation9 + $0xec] sm:$0xf0] }
  0x1f   :  { %v1173_v2 = vld [vmem:[#allocation9 + $0xe4] sm:$0xf]  ;;  %v969_v3 = vor.u32 %v1175_v1, %v968_v0  ;;  %v970_v4 = vld [vmem:[#allocation9 + $0xf0] sm:$0xf0]  ;;  %v1096_v9 = vld [vmem:[#allocation9 + $0x1e0] sm:$0xf] }
  0x20   :  { %v1205_v5 = vld [vmem:[#allocation9 + $0x1e4] sm:$0xf]  ;;  %v1098_v6 = vld [vmem:[#allocation9 + $0x1f0] sm:$0xf0]  ;;  %v973_v7 = vor.u32 %v1173_v2, %v970_v4  ;;  %v1207_v10 = vld [vmem:[#allocation9 + $0x1ec] sm:$0xf0] }
  0x21   :  { %v1101_v8 = vor.u32 %v1205_v5, %v1098_v6  ;;  %v952_v11 = vld [vmem:[#allocation9 + $0xc0] sm:$0xf]  ;;  %528 = vmatpush.bf16.msra.mxu0 %v969_v3  ;;  %v1097_v12 = vor.u32 %v1207_v10, %v1096_v9  ;;  %v1171_v13 = vld [vmem:[#allocation9 + $0xcc] sm:$0xf0]  ;;  %v1169_v14 = vld [vmem:[#allocation9 + $0xc4] sm:$0xf] }
  0x22   :  { %v954_v15 = vld [vmem:[#allocation9 + $0xd0] sm:$0xf0]  ;;  %554 = vmatpush.bf16.msra.mxu2 %v973_v7  ;;  %v953_v16 = vor.u32 %v1171_v13, %v952_v11  ;;  %v1201_v18 = vld [vmem:[#allocation9 + $0x1c4] sm:$0xf]  ;;  %v1080_v20 = vld [vmem:[#allocation9 + $0x1c0] sm:$0xf] }
  0x23   :  { %567 = vmatpush.bf16.msra.mxu3 %v1101_v8  ;;  %v957_v17 = vor.u32 %v1169_v14, %v954_v15  ;;  %v1082_v19 = vld [vmem:[#allocation9 + $0x1d0] sm:$0xf0]  ;;  %541 = vmatpush.bf16.msra.mxu1 %v1097_v12  ;;  %v1203_v22 = vld [vmem:[#allocation9 + $0x1cc] sm:$0xf0]  ;;  %v936_v23 = vld [vmem:[#allocation9 + $0xa0] sm:$0xf] }
  0x24   :  { %v1085_v21 = vor.u32 %v1201_v18, %v1082_v19  ;;  %v1167_v24 = vld [vmem:[#allocation9 + $0xac] sm:$0xf0]  ;;  %v1081_v25 = vor.u32 %v1203_v22, %v1080_v20  ;;  %v1165_v26 = vld [vmem:[#allocation9 + $0xa4] sm:$0xf]  ;;  %v938_v27 = vld [vmem:[#allocation9 + $0xb0] sm:$0xf0] }
  0x25   :  { %v1197_v28 = vld [vmem:[#allocation9 + $0x1a4] sm:$0xf]  ;;  %529 = vmatpush.bf16.msra.mxu0 %v953_v16  ;;  %v937_v29 = vor.u32 %v1167_v24, %v936_v23  ;;  %v1066_v30 = vld [vmem:[#allocation9 + $0x1b0] sm:$0xf0]  ;;  %v1064_v31 = vld [vmem:[#allocation9 + $0x1a0] sm:$0xf]  ;;  %v941_v33 = vor.u32 %v1165_v26, %v938_v27 }
  0x26   :  { %v1199_v32 = vld [vmem:[#allocation9 + $0x1ac] sm:$0xf0]  ;;  %555 = vmatpush.bf16.msra.mxu2 %v957_v17  ;;  %v1069_v34 = vor.u32 %v1197_v28, %v1066_v30  ;;  %v920_v35 = vld [vmem:[#allocation9 + $0x80] sm:$0xf]  ;;  %v1161_v37 = vld [vmem:[#allocation9 + $0x84] sm:$0xf] }
  0x27   :  { %568 = vmatpush.bf16.msra.mxu3 %v1085_v21  ;;  %v1163_v36 = vld [vmem:[#allocation9 + $0x8c] sm:$0xf0]  ;;  %542 = vmatpush.bf16.msra.mxu1 %v1081_v25  ;;  %v1065_v38 = vor.u32 %v1199_v32, %v1064_v31  ;;  %v922_v39 = vld [vmem:[#allocation9 + $0x90] sm:$0xf0]  ;;  %v1193_v40 = vld [vmem:[#allocation9 + $0x184] sm:$0xf] }
  0x28   :  { %v1050_v41 = vld [vmem:[#allocation9 + $0x190] sm:$0xf0]  ;;  %v1048_v42 = vld [vmem:[#allocation9 + $0x180] sm:$0xf]  ;;  %v1195_v43 = vld [vmem:[#allocation9 + $0x18c] sm:$0xf0]  ;;  %v921_v44 = vor.u32 %v1163_v36, %v920_v35  ;;  %v925_v45 = vor.u32 %v1161_v37, %v922_v39 }
  0x29   :  { %530 = vmatpush.bf16.msra.mxu0 %v937_v29  ;;  %v1053_v46 = vor.u32 %v1193_v40, %v1050_v41  ;;  %v904_v47 = vld [vmem:[#allocation9 + $0x60] sm:$0xf]  ;;  %v1159_v48 = vld [vmem:[#allocation9 + $0x6c] sm:$0xf0]  ;;  %v1157_v49 = vld [vmem:[#allocation9 + $0x64] sm:$0xf]  ;;  %v1049_v50 = vor.u32 %v1195_v43, %v1048_v42 }
  0x2a   :  { %556 = vmatpush.bf16.msra.mxu2 %v941_v33  ;;  %v906_v51 = vld [vmem:[#allocation9 + $0x70] sm:$0xf0]  ;;  %v1189_v52 = vld [vmem:[#allocation9 + $0x164] sm:$0xf]  ;;  %v1032_v54 = vld [vmem:[#allocation9 + $0x160] sm:$0xf]  ;;  %v905_v56 = vor.u32 %v1159_v48, %v904_v47 }
  0x2b   :  { %569 = vmatpush.bf16.msra.mxu3 %v1069_v34  ;;  %543 = vmatpush.bf16.msra.mxu1 %v1065_v38  ;;  %v1034_v53 = vld [vmem:[#allocation9 + $0x170] sm:$0xf0]  ;;  %v1191_v55 = vld [vmem:[#allocation9 + $0x16c] sm:$0xf0]  ;;  %v909_v57 = vor.u32 %v1157_v49, %v906_v51  ;;  %v888_v59 = vld [vmem:[#allocation9 + $0x40] sm:$0xf] }
  0x2c   :  { %v1037_v58 = vor.u32 %v1189_v52, %v1034_v53  ;;  %v1155_v60 = vld [vmem:[#allocation9 + $0x4c] sm:$0xf0]  ;;  %v1153_v61 = vld [vmem:[#allocation9 + $0x44] sm:$0xf]  ;;  %v1033_v62 = vor.u32 %v1191_v55, %v1032_v54  ;;  %v890_v63 = vld [vmem:[#allocation9 + $0x50] sm:$0xf0] }
  0x2d   :  { %531 = vmatpush.bf16.msra.mxu0 %v921_v44  ;;  %v1185_v0 = vld [vmem:[#allocation9 + $0x144] sm:$0xf]  ;;  %v1018_v1 = vld [vmem:[#allocation9 + $0x150] sm:$0xf0]  ;;  %v1016_v2 = vld [vmem:[#allocation9 + $0x140] sm:$0xf]  ;;  %v889_v4 = vor.u32 %v1155_v60, %v888_v59  ;;  %v893_v5 = vor.u32 %v1153_v61, %v890_v63 }
  0x2e   :  { %557 = vmatpush.bf16.msra.mxu2 %v925_v45  ;;  %v1187_v3 = vld [vmem:[#allocation9 + $0x14c] sm:$0xf0]  ;;  %v1021_v6 = vor.u32 %v1185_v0, %v1018_v1  ;;  %v872_v7 = vld [vmem:[#allocation9 + $0x20] sm:$0xf]  ;;  %v1149_v9 = vld [vmem:[#allocation9 + $0x24] sm:$0xf] }
  0x2f   :  { %570 = vmatpush.bf16.msra.mxu3 %v1053_v46  ;;  %544 = vmatpush.bf16.msra.mxu1 %v1049_v50  ;;  %v1151_v8 = vld [vmem:[#allocation9 + $0x2c] sm:$0xf0]  ;;  %v1017_v10 = vor.u32 %v1187_v3, %v1016_v2  ;;  %v874_v11 = vld [vmem:[#allocation9 + $0x30] sm:$0xf0]  ;;  %v1181_v12 = vld [vmem:[#allocation9 + $0x124] sm:$0xf] }
  0x30   :  { %v1002_v13 = vld [vmem:[#allocation9 + $0x130] sm:$0xf0]  ;;  %v1000_v14 = vld [vmem:[#allocation9 + $0x120] sm:$0xf]  ;;  %v1183_v15 = vld [vmem:[#allocation9 + $0x12c] sm:$0xf0]  ;;  %v873_v17 = vor.u32 %v1151_v8, %v872_v7  ;;  %v877_v21 = vor.u32 %v1149_v9, %v874_v11 }
  0x31   :  { %532 = vmatpush.bf16.msra.mxu0 %v905_v56  ;;  %v856_v16 = vld [vmem:[#allocation9] sm:$0xf]  ;;  %v1147_v18 = vld [vmem:[#allocation9 + $0xc] sm:$0xf0]  ;;  %v119_v19 = vld [vmem:[#allocation3] sm:$0xff]  ;;  %v1005_v22 = vor.u32 %v1181_v12, %v1002_v13  ;;  %v1001_v27 = vor.u32 %v1183_v15, %v1000_v14  ;;  %s827_s23 = sshll.u32 %s1653_s10, 4  ;;  %s828_s23 = int_to_ptr.hbm [resolvable:$true] %s827_s23 }
  0x32   :  { %558 = vmatpush.bf16.msra.mxu2 %v909_v57  ;;  %v120_v20 = vld [vmem:[#allocation6] sm:$0xff]  ;;  %v1145_v23 = vld [vmem:[#allocation9 + $0x4] sm:$0xf]  ;;  %v976_v29 = vld [vmem:[#allocation9 + $0xe8] sm:$0xf]  ;;  %v857_v34 = vor.u32 %v1147_v18, %v856_v16  ;;  %s1519_s24 = smov [#allocation18]  }
  0x33   :  { %571 = vmatpush.bf16.msra.mxu3 %v1037_v58  ;;  %545 = vmatpush.bf16.msra.mxu1 %v1033_v62  ;;  %v858_v24 = vld [vmem:[#allocation9 + $0x10] sm:$0xf0]  ;;  %v1177_v25 = vld [vmem:[#allocation9 + $0x104] sm:$0xf]  ;;  %v1220_v26 = vpack.c.bf16 %v120_v20, %v119_v19  ;;  %v1176_v30 = vld [vmem:[#allocation9 + $0xf4] sm:$0xf0] }
  0x34   :  { %v986_v28 = vld [vmem:[#allocation9 + $0x110] sm:$0xf0]  ;;  %v1174_v31 = vld [vmem:[#allocation9 + $0xec] sm:$0xf]  ;;  %v978_v32 = vld [vmem:[#allocation9 + $0xf8] sm:$0xf0]  ;;  %v861_v39 = vor.u32 %v1145_v23, %v858_v24  ;;  %v977_v44 = vor.u32 %v1176_v30, %v976_v29 }
  0x35   :  { %533 = vmatpush.bf16.msra.mxu0 %v889_v4  ;;  %v1206_v33 = vld [vmem:[#allocation9 + $0x1ec] sm:$0xf]  ;;  %v1106_v35 = vld [vmem:[#allocation9 + $0x1f8] sm:$0xf0]  ;;  %v984_v36 = vld [vmem:[#allocation9 + $0x100] sm:$0xf]  ;;  %v202_v38 = vunpack.c.l.b16 %v1220_v26  ;;  %v989_v40 = vor.u32 %v1177_v25, %v986_v28  ;;  %v203_v43 = vunpack.c.h.b16 %v1220_v26  ;;  %v981_v45 = vor.u32 %v1174_v31, %v978_v32 }
  0x36   :  { %559 = vmatpush.bf16.msra.mxu2 %v893_v5  ;;  %v1179_v37 = vld [vmem:[#allocation9 + $0x10c] sm:$0xf0]  ;;  %v1104_v41 = vld [vmem:[#allocation9 + $0x1e8] sm:$0xf]  ;;  %v1208_v42 = vld [vmem:[#allocation9 + $0x1f4] sm:$0xf0]  ;;  %v1109_v47 = vor.u32 %v1206_v33, %v1106_v35 }
  0x37   :  { %572 = vmatpush.bf16.msra.mxu3 %v1021_v6  ;;  %546 = vmatpush.bf16.msra.mxu1 %v1017_v10  ;;  %v960_v46 = vld [vmem:[#allocation9 + $0xc8] sm:$0xf]  ;;  %v985_v48 = vor.u32 %v1179_v37, %v984_v36  ;;  %v1172_v49 = vld [vmem:[#allocation9 + $0xd4] sm:$0xf0]  ;;  %v1170_v50 = vld [vmem:[#allocation9 + $0xcc] sm:$0xf]  ;;  %v1596_v52 = vpack.c.b16 %v202_v38, %v202_v38  ;;  %v1105_v53 = vor.u32 %v1208_v42, %v1104_v41 }
  0x38   :  { %v962_v51 = vld [vmem:[#allocation9 + $0xd8] sm:$0xf0]  ;;  %v1202_v54 = vld [vmem:[#allocation9 + $0x1cc] sm:$0xf]  ;;  %v1598_v56 = vpack.c.b16 %v203_v43, %v203_v43  ;;  %v1088_v57 = vld [vmem:[#allocation9 + $0x1c8] sm:$0xf]  ;;  %v961_v59 = vor.u32 %v1172_v49, %v960_v46 }
  0x39   :  { %534 = vmatpush.bf16.msra.mxu0 %v873_v17  ;;  %v1090_v55 = vld [vmem:[#allocation9 + $0x1d8] sm:$0xf0]  ;;  %v1204_v58 = vld [vmem:[#allocation9 + $0x1d4] sm:$0xf0]  ;;  %v965_v60 = vor.u32 %v1170_v50, %v962_v51  ;;  %v944_v61 = vld [vmem:[#allocation9 + $0xa8] sm:$0xf] }
  0x3a   :  { %560 = vmatpush.bf16.msra.mxu2 %v877_v21  ;;  %v1093_v62 = vor.u32 %v1202_v54, %v1090_v55  ;;  %v1168_v63 = vld [vmem:[#allocation9 + $0xb4] sm:$0xf0]  ;;  %v1166_v0 = vld [vmem:[#allocation9 + $0xac] sm:$0xf]  ;;  %v946_v1 = vld [vmem:[#allocation9 + $0xb8] sm:$0xf0]  ;;  %v1089_v2 = vor.u32 %v1204_v58, %v1088_v57 }
  0x3b   :  { %573 = vmatpush.bf16.msra.mxu3 %v1005_v22  ;;  %547 = vmatpush.bf16.msra.mxu1 %v1001_v27  ;;  %v1198_v3 = vld [vmem:[#allocation9 + $0x1ac] sm:$0xf]  ;;  %v1074_v4 = vld [vmem:[#allocation9 + $0x1b8] sm:$0xf0]  ;;  %v1072_v5 = vld [vmem:[#allocation9 + $0x1a8] sm:$0xf]  ;;  %v945_v7 = vor.u32 %v1168_v63, %v944_v61  ;;  %v949_v8 = vor.u32 %v1166_v0, %v946_v1 }
  0x3c   :  { %v1200_v6 = vld [vmem:[#allocation9 + $0x1b4] sm:$0xf0]  ;;  %v928_v9 = vld [vmem:[#allocation9 + $0x88] sm:$0xf]  ;;  %v1077_v10 = vor.u32 %v1198_v3, %v1074_v4  ;;  %v1162_v12 = vld [vmem:[#allocation9 + $0x8c] sm:$0xf] }
  0x3d   :  { %535 = vmatpush.bf16.msra.mxu0 %v857_v34  ;;  %v1164_v11 = vld [vmem:[#allocation9 + $0x94] sm:$0xf0]  ;;  %v930_v13 = vld [vmem:[#allocation9 + $0x98] sm:$0xf0]  ;;  %v1073_v14 = vor.u32 %v1200_v6, %v1072_v5  ;;  %v1194_v15 = vld [vmem:[#allocation9 + $0x18c] sm:$0xf] }
  0x3e   :  { %561 = vmatpush.bf16.msra.mxu2 %v861_v39  ;;  %v1058_v16 = vld [vmem:[#allocation9 + $0x198] sm:$0xf0]  ;;  %v1056_v17 = vld [vmem:[#allocation9 + $0x188] sm:$0xf]  ;;  %v1196_v18 = vld [vmem:[#allocation9 + $0x194] sm:$0xf0]  ;;  %v929_v19 = vor.u32 %v1164_v11, %v928_v9  ;;  %v933_v20 = vor.u32 %v1162_v12, %v930_v13 }
  0x3f   :  { %574 = vmatpush.bf16.msra.mxu3 %v989_v40  ;;  %548 = vmatpush.bf16.msra.mxu1 %v985_v48  ;;  %v912_v21 = vld [vmem:[#allocation9 + $0x68] sm:$0xf]  ;;  %v1061_v22 = vor.u32 %v1194_v15, %v1058_v16  ;;  %v1160_v23 = vld [vmem:[#allocation9 + $0x74] sm:$0xf0]  ;;  %v1158_v24 = vld [vmem:[#allocation9 + $0x6c] sm:$0xf]  ;;  %v1057_v26 = vor.u32 %v1196_v18, %v1056_v17 }
  0x40   :  { %536 = vmatmul.bf16.vlgmr.msra.gmra.mxu0 %v1596_v52  ;;  %v914_v25 = vld [vmem:[#allocation9 + $0x78] sm:$0xf0]  ;;  %v1190_v27 = vld [vmem:[#allocation9 + $0x16c] sm:$0xf]  ;;  %v1040_v29 = vld [vmem:[#allocation9 + $0x168] sm:$0xf]  ;;  %v913_v31 = vor.u32 %v1160_v23, %v912_v21 }
  0x41   :  { %580 = vmatpush.bf16.msrb.mxu0 %v977_v44  ;;  %562 = vmatmul.bf16.vlgmr.msra.gmra.mxu2 %v1596_v52  ;;  %v1042_v28 = vld [vmem:[#allocation9 + $0x178] sm:$0xf0]  ;;  %v1192_v30 = vld [vmem:[#allocation9 + $0x174] sm:$0xf0]  ;;  %v917_v32 = vor.u32 %v1158_v24, %v914_v25  ;;  %v896_v33 = vld [vmem:[#allocation9 + $0x48] sm:$0xf] }
  0x42   :  { %606 = vmatpush.bf16.msrb.mxu2 %v981_v45  ;;  %575 = vmatmul.bf16.vlgmr.msra.gmra.mxu3 %v1598_v56  ;;  %v1045_v34 = vor.u32 %v1190_v27, %v1042_v28  ;;  %v1156_v35 = vld [vmem:[#allocation9 + $0x54] sm:$0xf0]  ;;  %v1154_v36 = vld [vmem:[#allocation9 + $0x4c] sm:$0xf]  ;;  %v898_v37 = vld [vmem:[#allocation9 + $0x58] sm:$0xf0]  ;;  %v1041_v38 = vor.u32 %v1192_v30, %v1040_v29 }
  0x43   :  { %619 = vmatpush.bf16.msrb.mxu3 %v1109_v47  ;;  %593 = vmatpush.bf16.msrb.mxu1 %v1105_v53  ;;  %v1186_v39 = vld [vmem:[#allocation9 + $0x14c] sm:$0xf]  ;;  %v1026_v40 = vld [vmem:[#allocation9 + $0x158] sm:$0xf0]  ;;  %v1024_v41 = vld [vmem:[#allocation9 + $0x148] sm:$0xf]  ;;  %v897_v43 = vor.u32 %v1156_v35, %v896_v33  ;;  %v901_v44 = vor.u32 %v1154_v36, %v898_v37 }
  0x44   :  { %549 = vmatmul.bf16.vlgmr.msra.gmra.mxu1 %v1598_v56  ;;  %v1188_v42 = vld [vmem:[#allocation9 + $0x154] sm:$0xf0]  ;;  %v880_v45 = vld [vmem:[#allocation9 + $0x28] sm:$0xf]  ;;  %v1029_v46 = vor.u32 %v1186_v39, %v1026_v40  ;;  %v1150_v48 = vld [vmem:[#allocation9 + $0x2c] sm:$0xf] }
  0x45   :  { %581 = vmatpush.bf16.msrb.mxu0 %v961_v59  ;;  %v1152_v47 = vld [vmem:[#allocation9 + $0x34] sm:$0xf0]  ;;  %v882_v49 = vld [vmem:[#allocation9 + $0x38] sm:$0xf0]  ;;  %v1025_v50 = vor.u32 %v1188_v42, %v1024_v41  ;;  %v1182_v51 = vld [vmem:[#allocation9 + $0x12c] sm:$0xf] }
  0x46   :  { %607 = vmatpush.bf16.msrb.mxu2 %v965_v60  ;;  %v1010_v53 = vld [vmem:[#allocation9 + $0x138] sm:$0xf0]  ;;  %v1008_v54 = vld [vmem:[#allocation9 + $0x128] sm:$0xf]  ;;  %v1184_v55 = vld [vmem:[#allocation9 + $0x134] sm:$0xf0]  ;;  %v881_v57 = vor.u32 %v1152_v47, %v880_v45  ;;  %v885_v58 = vor.u32 %v1150_v48, %v882_v49 }
  0x47   :  { %620 = vmatpush.bf16.msrb.mxu3 %v1093_v62  ;;  %594 = vmatpush.bf16.msrb.mxu1 %v1089_v2  ;;  %v864_v59 = vld [vmem:[#allocation9 + $0x8] sm:$0xf]  ;;  %v1013_v60 = vor.u32 %v1182_v51, %v1010_v53  ;;  %v1148_v61 = vld [vmem:[#allocation9 + $0x14] sm:$0xf0]  ;;  %v1146_v62 = vld [vmem:[#allocation9 + $0xc] sm:$0xf]  ;;  %v1009_v0 = vor.u32 %v1184_v55, %v1008_v54 }
  0x48   :  { %v866_v63 = vld [vmem:[#allocation9 + $0x18] sm:$0xf0]  ;;  %v1178_v1 = vld [vmem:[#allocation9 + $0x10c] sm:$0xf]  ;;  %v992_v3 = vld [vmem:[#allocation9 + $0x108] sm:$0xf]  ;;  %v865_v5 = vor.u32 %v1148_v61, %v864_v59 }
  0x49   :  { %582 = vmatpush.bf16.msrb.mxu0 %v945_v7  ;;  %v994_v2 = vld [vmem:[#allocation9 + $0x118] sm:$0xf0]  ;;  %v1180_v4 = vld [vmem:[#allocation9 + $0x114] sm:$0xf0]  ;;  %v869_v6 = vor.u32 %v1146_v62, %v866_v63  ;;  %v1608_v9 = vld [vmem:[#allocation11] sm:$0xf] }
  0x4a   :  { %608 = vmatpush.bf16.msrb.mxu2 %v949_v8  ;;  %v997_v7 = vor.u32 %v1178_v1, %v994_v2  ;;  %v993_v8 = vor.u32 %v1180_v4, %v992_v3  ;;  %v194_v13 = vperm.slane %v1608_v9, 1  ;;  %v1215_v23 = vld [vmem:[#allocation12 + $0x30] sm:$0xff]  ;;  %v1214_v28 = vld [vmem:[#allocation12 + $0x28] sm:$0xff]  ;;  %v195_v36 = vperm.slane %v1608_v9, 2  ;;  %s825_s25 = sshll.u32 %s1519_s24, 4  ;;  %s1520_s27 = smov [#allocation14]   ;;  %s826_s25 = int_to_ptr.vmem [resolvable:$true] %s825_s25 }
  0x4b   :  { %621 = vmatpush.bf16.msrb.mxu3 %v1077_v10  ;;  %595 = vmatpush.bf16.msrb.mxu1 %v1073_v14  ;;  %v193_v10 = vperm.slane %v1608_v9, 0  ;;  %v1211_v39 = vld [vmem:[#allocation12 + $0x10] sm:$0xff]  ;;  %v196_v54 = vperm.slane %v1608_v9, 3  ;;  %s792_s28 = sshll.u32 %s1520_s27, 4  ;;  %s794_s3 = sshll.u32 %s1650_s7, 4  ;;  %s793_s28 = int_to_ptr.vmem [resolvable:$true] %s792_s28  ;;  %s795_s3 = int_to_ptr.hbm [resolvable:$true] %s794_s3 }
  0x4c   :  { %v121_v4 = vld [vmem:[#allocation8] sm:$0xff]  ;;  %s1521_s10 = smov [#allocation15]   ;;  %s805_s13 = sshll.u32 %s1651_s8, 4  ;;  %s806_s13 = int_to_ptr.hbm [resolvable:$true] %s805_s13 }
  0x4d   :  { %583 = vmatpush.bf16.msrb.mxu0 %v929_v19  ;;  %s803_s11 = sshll.u32 %s1521_s10, 4  ;;  %s1522_s14 = smov [#allocation17]   ;;  %s804_s11 = int_to_ptr.vmem [resolvable:$true] %s803_s11 }
  0x4e   :  { %609 = vmatpush.bf16.msrb.mxu2 %v933_v20  ;;  %s814_s7 = sshll.u32 %s1522_s14, 4  ;;  %s816_s16 = sshll.u32 %s1652_s9, 4  ;;  %s815_s7 = int_to_ptr.vmem [resolvable:$true] %s814_s7  ;;  %s817_s16 = int_to_ptr.hbm [resolvable:$true] %s816_s16 }
  0x4f   :  { %622 = vmatpush.bf16.msrb.mxu3 %v1061_v22  ;;  %596 = vmatpush.bf16.msrb.mxu1 %v1057_v26 }
  0x51   :  { %584 = vmatpush.bf16.msrb.mxu0 %v913_v31  ;;  %v1213_v31 = vld [vmem:[#allocation12 + $0x20] sm:$0xff] }
  0x52   :  { %610 = vmatpush.bf16.msrb.mxu2 %v917_v32 }
  0x53   :  { %623 = vmatpush.bf16.msrb.mxu3 %v1045_v34  ;;  %597 = vmatpush.bf16.msrb.mxu1 %v1041_v38  ;;  %v1212_v34 = vld [vmem:[#allocation12 + $0x18] sm:$0xff] }
  0x55   :  { %585 = vmatpush.bf16.msrb.mxu0 %v897_v43 }
  0x56   :  { %611 = vmatpush.bf16.msrb.mxu2 %v901_v44 }
  0x57   :  { %624 = vmatpush.bf16.msrb.mxu3 %v1029_v46  ;;  %598 = vmatpush.bf16.msrb.mxu1 %v1025_v50  ;;  %v1210_v46 = vld [vmem:[#allocation12 + $0x8] sm:$0xff] }
  0x59   :  { %586 = vmatpush.bf16.msrb.mxu0 %v881_v57 }
  0x5a   :  { %612 = vmatpush.bf16.msrb.mxu2 %v885_v58 }
  0x5b   :  { %625 = vmatpush.bf16.msrb.mxu3 %v1013_v60  ;;  %599 = vmatpush.bf16.msrb.mxu1 %v1009_v0  ;;  %v1209_v60 = vld [vmem:[#allocation12] sm:$0xff] }
  0x5d   :  { %587 = vmatpush.bf16.msrb.mxu0 %v865_v5 }
  0x5e   :  { %613 = vmatpush.bf16.msrb.mxu2 %v869_v6 }
  0x5f   :  { %626 = vmatpush.bf16.msrb.mxu3 %v997_v7  ;;  %600 = vmatpush.bf16.msrb.mxu1 %v993_v8 }
  0x60   :  { %588 = vmatmul.bf16.vlgmr.msrb.gmra.mxu0 %v1596_v52 }
  0x61   :  { %614 = vmatmul.bf16.vlgmr.msrb.gmra.mxu2 %v1596_v52  ;;  %v1216_v52 = vld [vmem:[#allocation12 + $0x38] sm:$0xff] }
  0x62   :  { %627 = vmatmul.bf16.vlgmr.msrb.gmra.mxu3 %v1598_v56  ;;  %601 = vmatmul.bf16.vlgmr.msrb.gmra.mxu1 %v1598_v56 }
  0x63   :  { %764 = vmatpush.bf16.msra.mxu0 %v1216_v52 }
  0x67   :  { %765 = vmatpush.bf16.msra.mxu0 %v1215_v23 }
  0x6b   :  { %766 = vmatpush.bf16.msra.mxu0 %v1214_v28 }
  0x6f   :  { %767 = vmatpush.bf16.msra.mxu0 %v1213_v31 }
  0x73   :  { %768 = vmatpush.bf16.msra.mxu0 %v1212_v34 }
  0x77   :  { %769 = vmatpush.bf16.msra.mxu0 %v1211_v39 }
  0x7b   :  { %770 = vmatpush.bf16.msra.mxu0 %v1210_v46 }
  0x7f   :  { %771 = vmatpush.bf16.msra.mxu0 %v1209_v60 }
  0xbd   :  { %v537_v11 = vpop.f32.mrf.mxu0 }
  0xbe   :  { %v538_v12 = vadd.f32 %v537_v11, %v193_v10 }
  0xc1   :  { %v550_v14 = vpop.f32.mrf.mxu1 }
  0xc2   :  { %v551_v15 = vadd.f32 %v550_v14, %v538_v12 }
  0xc4   :  { %v563_v16 = vpop.f32.mrf.mxu2  ;;  %v1110_v17 = vmul.f32 -1.442695, %v551_v15 }
  0xc5   :  { %v564_v18 = vadd.f32 %v563_v16, %v194_v13  ;;  %v576_v19 = vpop.f32.mrf.mxu3  ;;  %v539_v21 = vpop.f32.mrf.mxu0 }
  0xc6   :  { %1237 = vpow2.f32 %v1110_v17 }
  0xc7   :  { %v577_v20 = vadd.f32 %v576_v19, %v564_v18 }
  0xc9   :  { %v1111_v56 = vmul.f32 -1.442695, %v577_v20  ;;  %v552_v22 = vpop.f32.mrf.mxu1 }
  0xcb   :  { %1239 = vpow2.f32 %v1111_v56 }
  0xcc   :  { %v1238_v24 = vpop.eup %1237  ;;  %v565_v25 = vpop.f32.mrf.mxu2 }
  0xcd   :  { %v635_v26 = vadd.f32 1.0, %v1238_v24  ;;  %v578_v27 = vpop.f32.mrf.mxu3 }
  0xcf   :  { %1241 = vrcp.f32 %v635_v26  ;;  %vm641_vm0 = vweird.f32 %v635_v26  ;;  %v645_v42 = vand.u32 2147483647, %v635_v26  ;;  %v647_v45 = vand.u32 2147483648, %v635_v26 }
  0xd1   :  { %v1240_v29 = vpop.eup %1239  ;;  %v648_v59 = vor.u32 1.1754944e-38, %v647_v45  ;;  %vm646_vm6 = vcmp.eq.f32.partialorder %v645_v42, 8.507059e+37 }
  0xd2   :  { %v654_v30 = vadd.f32 1.0, %v1240_v29  ;;  %v1236_v29 = vld [vmem:[%s1649_s6] ss:$0 sm:$0xff] }
  0xd4   :  { %1243 = vrcp.f32 %v654_v30  ;;  %vm660_vm2 = vweird.f32 %v654_v30  ;;  %v666_v43 = vand.u32 2147483648, %v654_v30  ;;  %v664_v50 = vand.u32 2147483647, %v654_v30 }
  0xd5   :  { %v1242_v32 = vpop.eup %1241 }
  0xd6   :  { %v637_v33 = vmul.f32 %v1242_v32, %v635_v26  ;;  %vm642_vm1 = vweird.f32 %v1242_v32  ;;  %v667_v58 = vor.u32 1.1754944e-38, %v666_v43  ;;  %vm665_vm7 = vcmp.eq.f32.partialorder %v664_v50, 8.507059e+37 }
  0xd7   :  { %vm1614_vm4 = vmor %vm641_vm0, %vm642_vm1 }
  0xd8   :  { %v638_v35 = vsub.f32 1.0, %v637_v33 }
  0xda   :  { %v1244_v37 = vpop.eup %1243  ;;  %v639_v38 = vmul.f32 %v1242_v32, %v638_v35 }
  0xdb   :  { %v656_v40 = vmul.f32 %v1244_v37, %v654_v30  ;;  %vm661_vm3 = vweird.f32 %v1244_v37 }
  0xdc   :  { %v640_v49 = vadd.f32 %v1242_v32, %v639_v38  ;;  %vm1620_vm5 = vmor %vm660_vm2, %vm661_vm3 }
  0xdd   :  { %v589_v41 = vpop.f32.mrf.mxu0  ;;  %v657_v47 = vsub.f32 1.0, %v656_v40 }
  0xde   :  { %v590_v44 = vadd.f32 %v589_v41, %v195_v36  ;;  %v644_v61 = vsel %vm1614_vm4, %v1242_v32, %v640_v49  ;;  %v777_v32 = vlaneseq }
  0xdf   :  { %v602_v48 = vpop.f32.mrf.mxu1  ;;  %v658_v55 = vmul.f32 %v1244_v37, %v657_v47  ;;  %v649_v5 = vsel %vm646_vm6, %v648_v59, %v644_v61 }
  0xe0   :  { %v603_v51 = vadd.f32 %v602_v48, %v590_v44  ;;  %v778_v34 = vand.u32 127, %v777_v32 }
  0xe1   :  { %v659_v62 = vadd.f32 %v1244_v37, %v658_v55 }
  0xe2   :  { %1245 = vtanh.f32 %v603_v51  ;;  %vm779_vm12 = vcmp.lt.s32.totalorder %v778_v34, 64 }
  0xe3   :  { %v663_v2 = vsel %vm1620_vm5, %v1244_v37, %v659_v62 }
  0xe4   :  { %v615_v63 = vpop.f32.mrf.mxu2  ;;  %v668_v6 = vsel %vm665_vm7, %v667_v58, %v663_v2 }
  0xe5   :  { %v616_v0 = vadd.f32 %v615_v63, %v196_v54  ;;  %v628_v1 = vpop.f32.mrf.mxu3  ;;  %v591_v3 = vpop.f32.mrf.mxu0  ;;  %v690_v11 = vmul.f32 %v668_v6, %v121_v4 }
  0xe7   :  { %v629_v7 = vadd.f32 %v628_v1, %v616_v0  ;;  %v604_v8 = vpop.f32.mrf.mxu1 }
  0xe8   :  { %v1246_v9 = vpop.eup %1245 }
  0xe9   :  { %v1112_v10 = vmul.f32 -1.442695, %v629_v7  ;;  %v691_v12 = vmul.f32 %v1246_v9, %v649_v5 }
  0xeb   :  { %1247 = vpow2.f32 %v1112_v10  ;;  %v692_v13 = vadd.f32 %v691_v12, %v690_v11 }
  0xec   :  { %v617_v14 = vpop.f32.mrf.mxu2 }
  0xed   :  { %v630_v15 = vpop.f32.mrf.mxu3  ;;  %786 = vst [vmem:[#allocation18] sm:$0xff] %v692_v13 }
  0xee   :  { %830 = dma.vmem_to_hbm [thread:$0]  %s826_s25, 128, %s828_s23, [#allocation19]  }
  0xf1   :  { %v1248_v16 = vpop.eup %1247 }
  0xf2   :  { %v674_v17 = vadd.f32 1.0, %v1248_v16 }
  0xf4   :  { %1249 = vrcp.f32 %v674_v17  ;;  %v686_v20 = vand.u32 2147483648, %v674_v17  ;;  %v684_v56 = vand.u32 2147483647, %v674_v17  ;;  %vm680_vm9 = vweird.f32 %v674_v17 }
  0xf5   :  { %1251 = vtanh.f32 %v692_v13 }
  0xf6   :  { %v687_v23 = vor.u32 1.1754944e-38, %v686_v20  ;;  %vm685_vm11 = vcmp.eq.f32.partialorder %v684_v56, 8.507059e+37 }
  0xfa   :  { %v1250_v18 = vpop.eup %1249 }
  0xfb   :  { %v676_v19 = vmul.f32 %v1250_v18, %v674_v17  ;;  %vm681_vm8 = vweird.f32 %v1250_v18  ;;  %v1252_v25 = vpop.eup %1251 }
  0xfc   :  { %vm682_vm10 = vmor %vm680_vm9, %vm681_vm8 }
  0xfd   :  { %v677_v52 = vsub.f32 1.0, %v676_v19 }
  0xff   :  { %v678_v21 = vmul.f32 %v1250_v18, %v677_v52 }
 0x101   :  { %v679_v22 = vadd.f32 %v1250_v18, %v678_v21 }
 0x103   :  { %v683_v24 = vsel %vm682_vm10, %v1250_v18, %v679_v22 }
 0x104   :  { %v688_v26 = vsel %vm685_vm11, %v687_v23, %v683_v24 }
 0x105   :  { %v694_v27 = vmul.f32 %v1252_v25, %v688_v26 }
 0x107   :  { %v695_v28 = vpack.c.bf16 %v694_v27, %v694_v27  ;;  %785 = vst [vmem:[#allocation17] sm:$0xff] %v694_v27 }
 0x109   :  { %772 = vmatmul.bf16.vlgmr.msra.gmra.mxu0 %v695_v28 }
 0x186   :  { %v773_v30 = vpop.f32.mrf.mxu0 }
 0x187   :  { %v774_v31 = vadd.f32 %v1236_v29, %v773_v30 }
 0x189   :  { %v780_v33 = vmul.f32 1.442695, %v774_v31  ;;  %783 = vst [vmem:[#allocation14] sm:$0xff] %v774_v31 }
 0x18a   :  { %797 = dma.vmem_to_hbm [thread:$0]  %s793_s28, 128, %s795_s3, [#allocation5]  }
 0x18b   :  { %1253 = vpow2.f32 %v780_v33 }
 0x18e   :  { %v775_v35 = vpop.f32.mrf.mxu0 }
 0x191   :  { %v1254_v36 = vpop.eup %1253 }
 0x192   :  { %v782_v37 = vsel %vm779_vm12, %v774_v31, %v1254_v36 }
 0x193   :  { %784 = vst [vmem:[#allocation15] sm:$0xff] %v782_v37 }
 0x194   :  { %808 = dma.vmem_to_hbm [thread:$0]  %s804_s11, 128, %s806_s13, [#allocation16]  }
 0x195   :  { %819 = dma.vmem_to_hbm [thread:$0]  %s815_s7, 128, %s817_s16, [#allocation16]  }
 0x196   :  { %1503 = dma.done.wait [#allocation5], 128  }
 0x197   :  { %1504 = vsyncadd [#allocation5], 4294967168 }
 0x198   :  { %1505 = dma.done.wait [#allocation16], 256  }
 0x199   :  { %1506 = vsyncadd [#allocation16], 4294967040 }
 0x19a   :  { %1507 = dma.done.wait [#allocation19], 128  }
 0x19b   :  { %1508 = vsyncadd [#allocation19], 4294967168 }
 0x19c   :  { %847 = vsyncpa [#allocation4], 1 }
 0x19d   :  { %848 = vsyncpa [#allocation7], 1 }
 0x19e   :  { %849 = vsyncpa [#allocation10], 1 }
 0x19f   :  { %850 = vsyncpa [#allocation13], 1 }
 0x1a0   :  { %851 = vsyncpa [#allocation5], 1 }
 0x1a1   :  { %852 = vsyncpa [#allocation16], 1 }
 0x1a2   :  { %853 = vsyncpa [#allocation19], 1 }

</bundles_post_ra>
